<compile_context>
chip_gen: v7x
topology: tpu7x:2x2x1
jax: 0.10.0
libtpu: 0.0.40
codegen_flags: <defaults>
</compile_context>

<pallas_src>
import functools

import jax
import jax.numpy as jnp
from jax.experimental import pallas as pl
from jax.experimental.pallas import tpu as pltpu


def _round_up(x, m):
    return ((x + m - 1) // m) * m


def _grad_loss_tile_kernel(out_ref, tgt_ref, part_ref, *, H, W, Ha, Wa):
    """Per-tile partial sums for GradLoss.

    out_ref/tgt_ref: (Rt, Wa) tiles, Rt = Bt*Ha.  Each image occupies Ha rows;
    within an image, row 0 / col 0 and rows >= H+1 / cols >= W+1 are zero
    padding (conv halo + alignment).  part_ref: (8,128) f32; lanes 0..3 hold
    (mse_sum, mse_cnt, grad_sq_sum, grad_cnt).
    """
    out = out_ref[...].astype(jnp.float32)
    tgt = tgt_ref[...].astype(jnp.float32)
    rt = out.shape[0]

    # Within-image (padded) row index rr = row mod Ha, via exact f32 arithmetic
    # (row < 2^24, so this is bit-exact); column index is a plain lane iota.
    rows = jax.lax.broadcasted_iota(jnp.int32, (rt, Wa), 0).astype(jnp.float32)
    rr = rows - jnp.floor(rows * jnp.float32(1.0 / Ha)) * jnp.float32(Ha)
    cols = jax.lax.broadcasted_iota(jnp.int32, (rt, Wa), 1)

    row_le = rr <= jnp.float32(H)
    col_le = cols <= W
    in_img = (rr >= jnp.float32(1.0)) & row_le & (cols >= 1) & col_le
    grad_rgn = (rr >= jnp.float32(2.0)) & row_le & (cols >= 2) & col_le

    tnan = jnp.isnan(tgt)
    valid = jnp.logical_and(jnp.logical_not(tnan), in_img)
    # `diff` doubles as (a) the masked MSE residual and (b) the Sobel conv
    # input: padding is 0 in both arrays, and NaN-target pixels are zeroed
    # (every conv window touching them is masked out below).
    diff = jnp.where(valid, out - tgt, 0.0)

    mse_sum = jnp.sum(diff * diff)
    mse_cnt = jnp.sum(valid.astype(jnp.float32))

    # 3x3-window NaN indicator (separable sum of shifted isnan taps).  Matches
    # torch, where even zero-weight Sobel taps propagate NaN via 0.0*NaN.
    tn = tnan.astype(jnp.float32)
    nw = tn + pltpu.roll(tn, shift=1, axis=1) + pltpu.roll(tn, shift=Wa - 1, axis=1)
    win = nw + pltpu.roll(nw, shift=1, axis=0) + pltpu.roll(nw, shift=rt - 1, axis=0)
    gmask = (win < 0.5) & grad_rgn
    g_cnt = jnp.sum(gmask.astype(jnp.float32))

    # Separable Sobel convs of diff ([1,2,1] x [1,0,-1]); conv is linear, so on
    # unmasked windows conv(out) - conv(tgt) == conv(diff) exactly.
    dl = pltpu.roll(diff, shift=1, axis=1)        # diff[:, c-1]
    dr = pltpu.roll(diff, shift=Wa - 1, axis=1)   # diff[:, c+1]
    a = dl - dr                                   # [1, 0, -1] along W
    b = dl + dr + 2.0 * diff                      # [1, 2, 1] along W

    gx = jnp.where(
        gmask,
        pltpu.roll(a, shift=1, axis=0) + 2.0 * a + pltpu.roll(a, shift=rt - 1, axis=0),
        0.0)
    g_sum = jnp.sum(gx * gx)
    gy = jnp.where(
        gmask,
        pltpu.roll(b, shift=1, axis=0) - pltpu.roll(b, shift=rt - 1, axis=0),
        0.0)
    g_sum = g_sum + jnp.sum(gy * gy)

    lane = jax.lax.broadcasted_iota(jnp.int32, (8, 128), 1)
    part_ref[...] = (jnp.where(lane == 0, mse_sum, 0.0) +
                     jnp.where(lane == 1, mse_cnt, 0.0) +
                     jnp.where(lane == 2, g_sum, 0.0) +
                     jnp.where(lane == 3, g_cnt, 0.0))


def grad_loss(output, target, alpha=1.0, max_tile_bytes=1 << 20):
    """Pallas-TPU forward of GradLoss (NCHW inputs, C must be 1)."""
    N, C, H, W = output.shape
    assert C == 1, "groups=C depthwise conv with a (1,1,3,3) weight requires C == 1"
    assert target.shape == output.shape
    B = N * C

    Ha = _round_up(H + 2, 8)      # conv halo (+1 each side) + sublane alignment
    Wa = _round_up(W + 2, 128)    # conv halo (+1 each side) + lane alignment

    pad = ((0, 0), (1, Ha - H - 1), (1, Wa - W - 1))
    o_p = jnp.pad(output.reshape(B, H, W), pad).reshape(B * Ha, Wa)
    t_p = jnp.pad(target.reshape(B, H, W), pad).reshape(B * Ha, Wa)

    # Batch tile: largest divisor of B whose f32 tile fits the budget.
    img_bytes = Ha * Wa * 4
    cap = max(1, min(B, max_tile_bytes // img_bytes))
    bt = 1
    for d in range(cap, 0, -1):
        if B % d == 0:
            bt = d
            break
    num_tiles = B // bt
    rt = bt * Ha
    # TODO(synk): for very large single images also tile over H with a +2-row
    # halo; batch tiling alone covers typical image sizes.

    kernel = functools.partial(_grad_loss_tile_kernel, H=H, W=W, Ha=Ha, Wa=Wa)
    parts = pl.pallas_call(
        kernel,
        out_shape=jax.ShapeDtypeStruct((num_tiles * 8, 128), jnp.float32),
        grid=(num_tiles,),
        in_specs=[
            pl.BlockSpec((rt, Wa), lambda i: (i, 0)),
            pl.BlockSpec((rt, Wa), lambda i: (i, 0)),
        ],
        out_specs=pl.BlockSpec((8, 128), lambda i: (i, 0)),
        compiler_params=pltpu.CompilerParams(
            dimension_semantics=("parallel",),
            vmem_limit_bytes=32 * 1024 * 1024,
        ),
    )(o_p, t_p)

    sums = parts.reshape(num_tiles, 8, 128)[:, 0, :].sum(axis=0)
    mse_sum, mse_cnt, g_sum, g_cnt = sums[0], sums[1], sums[2], sums[3]
    nan = jnp.float32(jnp.nan)
    mse = jnp.where(mse_cnt > 0, mse_sum / mse_cnt, nan)
    # grad_loss_x and grad_loss_y share the same valid count, so their sum is
    # (sum_x + sum_y) / count.
    grad = jnp.where(g_cnt > 0, g_sum / g_cnt, nan)
    combined = mse + jnp.float32(alpha) * grad
    return jnp.where(jnp.isnan(combined), jnp.float32(0.0), combined)


def _grad_loss_ref(output, target, alpha=1.0):
    """Pure-JAX reference replicating the torch module's semantics."""
    N, C, H, W = output.shape
    o = output.reshape(N * C, H, W).astype(jnp.float32)
    t = target.reshape(N * C, H, W).astype(jnp.float32)
    op = jnp.pad(o, ((0, 0), (1, 1), (1, 1)))
    tp = jnp.pad(t, ((0, 0), (1, 1), (1, 1)))
    sx = jnp.array([[1, 0, -1], [2, 0, -2], [1, 0, -1]], jnp.float32)
    sy = jnp.array([[1, 2, 1], [0, 0, 0], [-1, -2, -1]], jnp.float32)

    def conv(p, k):
        acc = jnp.zeros_like(o)
        for i in range(3):
            for j in range(3):
                acc = acc + k[i, j] * p[:, i:i + H, j:j + W]
        return acc

    valid = ~jnp.isnan(t)
    d = jnp.where(valid, o - t, 0.0)
    mse = jnp.where(valid.sum() > 0, (d * d).sum() / valid.sum(), jnp.nan)
    gxo, gyo, gxt, gyt = conv(op, sx), conv(op, sy), conv(tp, sx), conv(tp, sy)
    hh = jnp.arange(H)[:, None] >= 1
    ww = jnp.arange(W)[None, :] >= 1
    gmask = valid & (hh & ww)[None]

    def nmse(a, b, m):
        mm = m & ~jnp.isnan(b)
        dd = jnp.where(mm, a - b, 0.0)
        return jnp.where(mm.sum() > 0, (dd * dd).sum() / mm.sum(), jnp.nan)

    comb = mse + alpha * (nmse(gxo, gxt, gmask) + nmse(gyo, gyt, gmask))
    return jnp.where(jnp.isnan(comb), 0.0, comb)


if __name__ == "__main__":
    key = jax.random.PRNGKey(0)
    k1, k2, k3 = jax.random.split(key, 3)
    N, C, H, W = 2, 1, 16, 16
    output = jax.random.normal(k1, (N, C, H, W), jnp.float32)
    target = jax.random.normal(k2, (N, C, H, W), jnp.float32)
    # Sprinkle NaNs into the target to exercise the masking paths.
    nan_mask = jax.random.uniform(k3, (N, C, H, W)) < 0.15
    target = jnp.where(nan_mask, jnp.nan, target)

    ref = jax.block_until_ready(_grad_loss_ref(output, target, alpha=1.0))

    # Default tiling (whole batch in one tile).
    loss = jax.block_until_ready(grad_loss(output, target, alpha=1.0))
    assert jnp.allclose(loss, ref, rtol=1e-5, atol=1e-5), (loss, ref)

    # Force multiple batch tiles (grid > 1) to exercise the partial-sum path.
    loss_tiled = jax.block_until_ready(
        grad_loss(output, target, alpha=1.0, max_tile_bytes=4 * 1024))
    assert jnp.allclose(loss_tiled, ref, rtol=1e-5, atol=1e-5), (loss_tiled, ref)

    # All-NaN target -> the NaN guard must return exactly 0.
    loss_nan = jax.block_until_ready(
        grad_loss(output, jnp.full_like(target, jnp.nan), alpha=1.0))
    assert jnp.allclose(loss_nan, 0.0), loss_nan

    print("KERNEL_OK")
</pallas_src>

<mosaic_0001>
module attributes {stable_mosaic.version = 11 : i64} {
  func.func @_grad_loss_tile_kernel(%arg0: i32, %arg1: memref<48x128xf32, #tpu.memory_space<vmem>>, %arg2: memref<48x128xf32, #tpu.memory_space<vmem>>, %arg3: memref<8x128xf32, #tpu.memory_space<vmem>>) attributes {dimension_semantics = [#tpu.dimension_semantics<parallel>], iteration_bounds = array<i64: 1>, scalar_prefetch = 0 : i64, scratch_operands = 0 : i64, tpu.core_type = #tpu.core_type<tc>, window_params = [{transform_indices = @transform_0, window_bounds = array<i64: 48, 128>}, {transform_indices = @transform_1, window_bounds = array<i64: 48, 128>}, {transform_indices = @transform_2, window_bounds = array<i64: 8, 128>}]} {
    %c0 = arith.constant 0 : index
    %c0_0 = arith.constant 0 : index
    %0 = vector.load %arg1[%c0, %c0_0] : memref<48x128xf32, #tpu.memory_space<vmem>>, vector<48x128xf32>
    %c0_1 = arith.constant 0 : index
    %c0_2 = arith.constant 0 : index
    %1 = vector.load %arg2[%c0_1, %c0_2] : memref<48x128xf32, #tpu.memory_space<vmem>>, vector<48x128xf32>
    %2 = tpu.iota {dimensions = array<i32: 0>} : vector<48x128xi32>
    %3 = arith.sitofp %2 : vector<48x128xi32> to vector<48x128xf32>
    %cst = arith.constant 0.0416666679 : f32
    %4 = vector.broadcast %cst : f32 to vector<48x128xf32>
    %5 = arith.mulf %3, %4 : vector<48x128xf32>
    %6 = math.floor %5 : vector<48x128xf32>
    %cst_3 = arith.constant 2.400000e+01 : f32
    %7 = vector.broadcast %cst_3 : f32 to vector<48x128xf32>
    %8 = arith.mulf %6, %7 : vector<48x128xf32>
    %9 = arith.subf %3, %8 : vector<48x128xf32>
    %10 = tpu.iota {dimensions = array<i32: 1>} : vector<48x128xi32>
    %cst_4 = arith.constant 1.600000e+01 : f32
    %11 = vector.broadcast %cst_4 : f32 to vector<48x128xf32>
    %12 = arith.cmpf ole, %9, %11 : vector<48x128xf32>
    %c16_i32 = arith.constant 16 : i32
    %13 = vector.broadcast %c16_i32 : i32 to vector<48x128xi32>
    %14 = arith.cmpi sle, %10, %13 : vector<48x128xi32>
    %cst_5 = arith.constant 1.000000e+00 : f32
    %15 = vector.broadcast %cst_5 : f32 to vector<48x128xf32>
    %16 = arith.cmpf oge, %9, %15 : vector<48x128xf32>
    %17 = arith.andi %16, %12 : vector<48x128xi1>
    %c1_i32 = arith.constant 1 : i32
    %18 = vector.broadcast %c1_i32 : i32 to vector<48x128xi32>
    %19 = arith.cmpi sge, %10, %18 : vector<48x128xi32>
    %20 = arith.andi %17, %19 : vector<48x128xi1>
    %21 = arith.andi %20, %14 : vector<48x128xi1>
    %cst_6 = arith.constant 2.000000e+00 : f32
    %22 = vector.broadcast %cst_6 : f32 to vector<48x128xf32>
    %23 = arith.cmpf oge, %9, %22 : vector<48x128xf32>
    %24 = arith.andi %23, %12 : vector<48x128xi1>
    %c2_i32 = arith.constant 2 : i32
    %25 = vector.broadcast %c2_i32 : i32 to vector<48x128xi32>
    %26 = arith.cmpi sge, %10, %25 : vector<48x128xi32>
    %27 = arith.andi %24, %26 : vector<48x128xi1>
    %28 = arith.andi %27, %14 : vector<48x128xi1>
    %29 = arith.cmpf one, %1, %1 : vector<48x128xf32>
    %cst_7 = arith.constant dense<true> : vector<48x128xi1>
    %30 = arith.xori %29, %cst_7 : vector<48x128xi1>
    %31 = arith.andi %30, %21 : vector<48x128xi1>
    %32 = arith.subf %0, %1 : vector<48x128xf32>
    %cst_8 = arith.constant 0.000000e+00 : f32
    %33 = vector.broadcast %cst_8 : f32 to vector<48x128xf32>
    %34 = arith.select %31, %32, %33 : vector<48x128xi1>, vector<48x128xf32>
    %35 = arith.mulf %34, %34 : vector<48x128xf32>
    %36 = vector.shape_cast %35 : vector<48x128xf32> to vector<1x48x128xf32>
    %cst_9 = arith.constant dense<0.000000e+00> : vector<1xf32>
    %37 = vector.multi_reduction <add>, %36, %cst_9 [1, 2] : vector<1x48x128xf32> to vector<1xf32>
    %38 = vector.shape_cast %37 : vector<1xf32> to vector<1x1x1xf32>
    %39 = vector.extract %38[0, 0, 0] : f32 from vector<1x1x1xf32>
    %40 = arith.extui %31 : vector<48x128xi1> to vector<48x128xi32>
    %41 = arith.sitofp %40 : vector<48x128xi32> to vector<48x128xf32>
    %42 = vector.shape_cast %41 : vector<48x128xf32> to vector<1x48x128xf32>
    %cst_10 = arith.constant dense<0.000000e+00> : vector<1xf32>
    %43 = vector.multi_reduction <add>, %42, %cst_10 [1, 2] : vector<1x48x128xf32> to vector<1xf32>
    %44 = vector.shape_cast %43 : vector<1xf32> to vector<1x1x1xf32>
    %45 = vector.extract %44[0, 0, 0] : f32 from vector<1x1x1xf32>
    %46 = arith.extui %29 : vector<48x128xi1> to vector<48x128xi32>
    %47 = arith.sitofp %46 : vector<48x128xi32> to vector<48x128xf32>
    %c1_i32_11 = arith.constant 1 : i32
    %48 = tpu.dynamic_rotate %47 by %c1_i32_11 dim 1 : vector<48x128xf32>, i32 -> vector<48x128xf32>
    %49 = arith.addf %47, %48 : vector<48x128xf32>
    %c127_i32 = arith.constant 127 : i32
    %50 = tpu.dynamic_rotate %47 by %c127_i32 dim 1 : vector<48x128xf32>, i32 -> vector<48x128xf32>
    %51 = arith.addf %49, %50 : vector<48x128xf32>
    %c1_i32_12 = arith.constant 1 : i32
    %52 = tpu.dynamic_rotate %51 by %c1_i32_12 dim 0 : vector<48x128xf32>, i32 -> vector<48x128xf32>
    %53 = arith.addf %51, %52 : vector<48x128xf32>
    %c47_i32 = arith.constant 47 : i32
    %54 = tpu.dynamic_rotate %51 by %c47_i32 dim 0 : vector<48x128xf32>, i32 -> vector<48x128xf32>
    %55 = arith.addf %53, %54 : vector<48x128xf32>
    %cst_13 = arith.constant 5.000000e-01 : f32
    %56 = vector.broadcast %cst_13 : f32 to vector<48x128xf32>
    %57 = arith.cmpf olt, %55, %56 : vector<48x128xf32>
    %58 = arith.andi %57, %28 : vector<48x128xi1>
    %59 = arith.extui %58 : vector<48x128xi1> to vector<48x128xi32>
    %60 = arith.sitofp %59 : vector<48x128xi32> to vector<48x128xf32>
    %61 = vector.shape_cast %60 : vector<48x128xf32> to vector<1x48x128xf32>
    %cst_14 = arith.constant dense<0.000000e+00> : vector<1xf32>
    %62 = vector.multi_reduction <add>, %61, %cst_14 [1, 2] : vector<1x48x128xf32> to vector<1xf32>
    %63 = vector.shape_cast %62 : vector<1xf32> to vector<1x1x1xf32>
    %64 = vector.extract %63[0, 0, 0] : f32 from vector<1x1x1xf32>
    %c1_i32_15 = arith.constant 1 : i32
    %65 = tpu.dynamic_rotate %34 by %c1_i32_15 dim 1 : vector<48x128xf32>, i32 -> vector<48x128xf32>
    %c127_i32_16 = arith.constant 127 : i32
    %66 = tpu.dynamic_rotate %34 by %c127_i32_16 dim 1 : vector<48x128xf32>, i32 -> vector<48x128xf32>
    %67 = arith.subf %65, %66 : vector<48x128xf32>
    %68 = arith.addf %65, %66 : vector<48x128xf32>
    %cst_17 = arith.constant 2.000000e+00 : f32
    %69 = vector.broadcast %cst_17 : f32 to vector<48x128xf32>
    %70 = arith.mulf %69, %34 : vector<48x128xf32>
    %71 = arith.addf %68, %70 : vector<48x128xf32>
    %c1_i32_18 = arith.constant 1 : i32
    %72 = tpu.dynamic_rotate %67 by %c1_i32_18 dim 0 : vector<48x128xf32>, i32 -> vector<48x128xf32>
    %cst_19 = arith.constant 2.000000e+00 : f32
    %73 = vector.broadcast %cst_19 : f32 to vector<48x128xf32>
    %74 = arith.mulf %73, %67 : vector<48x128xf32>
    %75 = arith.addf %72, %74 : vector<48x128xf32>
    %c47_i32_20 = arith.constant 47 : i32
    %76 = tpu.dynamic_rotate %67 by %c47_i32_20 dim 0 : vector<48x128xf32>, i32 -> vector<48x128xf32>
    %77 = arith.addf %75, %76 : vector<48x128xf32>
    %cst_21 = arith.constant 0.000000e+00 : f32
    %78 = vector.broadcast %cst_21 : f32 to vector<48x128xf32>
    %79 = arith.select %58, %77, %78 : vector<48x128xi1>, vector<48x128xf32>
    %80 = arith.mulf %79, %79 : vector<48x128xf32>
    %81 = vector.shape_cast %80 : vector<48x128xf32> to vector<1x48x128xf32>
    %cst_22 = arith.constant dense<0.000000e+00> : vector<1xf32>
    %82 = vector.multi_reduction <add>, %81, %cst_22 [1, 2] : vector<1x48x128xf32> to vector<1xf32>
    %83 = vector.shape_cast %82 : vector<1xf32> to vector<1x1x1xf32>
    %84 = vector.extract %83[0, 0, 0] : f32 from vector<1x1x1xf32>
    %c1_i32_23 = arith.constant 1 : i32
    %85 = tpu.dynamic_rotate %71 by %c1_i32_23 dim 0 : vector<48x128xf32>, i32 -> vector<48x128xf32>
    %c47_i32_24 = arith.constant 47 : i32
    %86 = tpu.dynamic_rotate %71 by %c47_i32_24 dim 0 : vector<48x128xf32>, i32 -> vector<48x128xf32>
    %87 = arith.subf %85, %86 : vector<48x128xf32>
    %cst_25 = arith.constant 0.000000e+00 : f32
    %88 = vector.broadcast %cst_25 : f32 to vector<48x128xf32>
    %89 = arith.select %58, %87, %88 : vector<48x128xi1>, vector<48x128xf32>
    %90 = arith.mulf %89, %89 : vector<48x128xf32>
    %91 = vector.shape_cast %90 : vector<48x128xf32> to vector<1x48x128xf32>
    %cst_26 = arith.constant dense<0.000000e+00> : vector<1xf32>
    %92 = vector.multi_reduction <add>, %91, %cst_26 [1, 2] : vector<1x48x128xf32> to vector<1xf32>
    %93 = vector.shape_cast %92 : vector<1xf32> to vector<1x1x1xf32>
    %94 = vector.extract %93[0, 0, 0] : f32 from vector<1x1x1xf32>
    %95 = arith.addf %84, %94 : f32
    %96 = tpu.iota {dimensions = array<i32: 1>} : vector<8x128xi32>
    %c0_i32 = arith.constant 0 : i32
    %97 = vector.broadcast %c0_i32 : i32 to vector<8x128xi32>
    %98 = arith.cmpi eq, %96, %97 : vector<8x128xi32>
    %cst_27 = arith.constant 0.000000e+00 : f32
    %99 = vector.broadcast %39 : f32 to vector<8x128xf32>
    %100 = vector.broadcast %cst_27 : f32 to vector<8x128xf32>
    %101 = arith.select %98, %99, %100 : vector<8x128xi1>, vector<8x128xf32>
    %c1_i32_28 = arith.constant 1 : i32
    %102 = vector.broadcast %c1_i32_28 : i32 to vector<8x128xi32>
    %103 = arith.cmpi eq, %96, %102 : vector<8x128xi32>
    %cst_29 = arith.constant 0.000000e+00 : f32
    %104 = vector.broadcast %45 : f32 to vector<8x128xf32>
    %105 = vector.broadcast %cst_29 : f32 to vector<8x128xf32>
    %106 = arith.select %103, %104, %105 : vector<8x128xi1>, vector<8x128xf32>
    %107 = arith.addf %101, %106 : vector<8x128xf32>
    %c2_i32_30 = arith.constant 2 : i32
    %108 = vector.broadcast %c2_i32_30 : i32 to vector<8x128xi32>
    %109 = arith.cmpi eq, %96, %108 : vector<8x128xi32>
    %cst_31 = arith.constant 0.000000e+00 : f32
    %110 = vector.broadcast %95 : f32 to vector<8x128xf32>
    %111 = vector.broadcast %cst_31 : f32 to vector<8x128xf32>
    %112 = arith.select %109, %110, %111 : vector<8x128xi1>, vector<8x128xf32>
    %113 = arith.addf %107, %112 : vector<8x128xf32>
    %c3_i32 = arith.constant 3 : i32
    %114 = vector.broadcast %c3_i32 : i32 to vector<8x128xi32>
    %115 = arith.cmpi eq, %96, %114 : vector<8x128xi32>
    %cst_32 = arith.constant 0.000000e+00 : f32
    %116 = vector.broadcast %64 : f32 to vector<8x128xf32>
    %117 = vector.broadcast %cst_32 : f32 to vector<8x128xf32>
    %118 = arith.select %115, %116, %117 : vector<8x128xi1>, vector<8x128xf32>
    %119 = arith.addf %113, %118 : vector<8x128xf32>
    %c0_33 = arith.constant 0 : index
    %c0_34 = arith.constant 0 : index
    %120 = vector.load %arg3[%c0_33, %c0_34] : memref<8x128xf32, #tpu.memory_space<vmem>>, vector<8x128xf32>
    tpu.vector_store %arg3[%c0_33, %c0_34], %119 {strides = array<i32>} : memref<8x128xf32, #tpu.memory_space<vmem>>, vector<8x128xf32>,
    return
  }
  func.func @transform_0(%arg0: i32) -> (i32, i32) {
    %c0_i32 = arith.constant 0 : i32
    %c0_i32_0 = arith.constant 0 : i32
    return %arg0, %c0_i32 : i32, i32
  }
  func.func @transform_1(%arg0: i32) -> (i32, i32) {
    %c0_i32 = arith.constant 0 : i32
    %c0_i32_0 = arith.constant 0 : i32
    return %arg0, %c0_i32 : i32, i32
  }
  func.func @transform_2(%arg0: i32) -> (i32, i32) {
    %c0_i32 = arith.constant 0 : i32
    %c0_i32_0 = arith.constant 0 : i32
    return %arg0, %c0_i32 : i32, i32
  }
}

</mosaic_0001>

<bundles_post_ra>
// kernel: tpu_custom_call.1
= control target key start
LH: loop header
LB: loop body
LE: loop exit
PB: predicated region body
PF: predicated region fallthrough
CT: control target
= control target key end

     0   :  { %7 = vsyncpa [#allocation3], 0  ;;  %s1474_s0 = inlined_call_operand.hbm [shape: f32[48,128], index: 0, kind: input, shape index: {}]   ;;  %s1475_s1 = inlined_call_operand.hbm [shape: f32[48,128], index: 1, kind: input, shape index: {}]   ;;  %s1476_s2 = inlined_call_operand.hbm [shape: f32[8,128], index: 2, kind: output, shape index: {}]  }
   0x1   :  { %8 = vsyncpa [#allocation6], 0 }
   0x2   :  { %9 = vsyncpa [#allocation4], 0  ;;  %s704_s9 = smov [#allocation2]   ;;  %s632_s13 = scalar_lea.hbm %s1474_s0, 768 }
   0x3   :  { %s15_s10 = sshll.u32 %s704_s9, 4  ;;  %p633_p0 = scmp.ne.s32.totalorder %s1474_s0, %s632_s13  ;;  %s16_s10 = int_to_ptr.vmem [resolvable:$true] %s15_s10 }
   0x4   :  { %p636_p1 = scmp.lt.u32.totalorder %s632_s13, %s1474_s0 }
   0x6   :  { %p638_p2 = pnand %p636_p1, %p633_p0 }
   0x8   :  { %641 = shalt.err (!%p638_p2)
}
   0x9   :  { %s642_s18 = scalar_lea.vmem %s16_s10, 768  ;;  %p647_p4 = scmp.lt.s32.totalorder %s16_s10, %s16_s10 }
   0xa   :  { %p643_p3 = scmp.ne.s32.totalorder %s16_s10, %s642_s18  ;;  %p648_p5 = scmp.lt.s32.totalorder %s642_s18, %s642_s18 }
   0xc   :  { %p649_p6 = por %p648_p5, %p647_p4 }
   0xe   :  { %p650_p7 = pnand %p649_p6, %p643_p3 }
  0x10   :  { %653 = shalt.err (!%p650_p7)
}
  0x11   :  { %s705_s19 = smov 128   ;;  %s706_s20 = smov 8  }
  0x12   :  { %21 = dma.hbm_to_vmem [thread:$0]  %s1474_s0, 768, %s16_s10, [#allocation3], %s705_s19, %s705_s19, %s706_s20  }
  0x13   :  { %s707_s23 = smov [#allocation5]   ;;  %s654_s27 = scalar_lea.hbm %s1475_s1, 768 }
  0x14   :  { %s27_s24 = sshll.u32 %s707_s23, 4  ;;  %p655_p8 = scmp.ne.s32.totalorder %s1475_s1, %s654_s27  ;;  %s28_s24 = int_to_ptr.vmem [resolvable:$true] %s27_s24 }
  0x15   :  { %p658_p9 = scmp.lt.u32.totalorder %s654_s27, %s1475_s1 }
  0x17   :  { %p660_p10 = pnand %p658_p9, %p655_p8 }
  0x19   :  { %663 = shalt.err (!%p660_p10)
}
  0x1a   :  { %s664_s4 = scalar_lea.vmem %s28_s24, 768  ;;  %p669_p12 = scmp.lt.s32.totalorder %s28_s24, %s28_s24 }
  0x1b   :  { %p665_p11 = scmp.ne.s32.totalorder %s28_s24, %s664_s4  ;;  %p670_p13 = scmp.lt.s32.totalorder %s664_s4, %s664_s4 }
  0x1d   :  { %p671_p0 = por %p670_p13, %p669_p12 }
  0x1f   :  { %p672_p1 = pnand %p671_p0, %p665_p11 }
  0x21   :  { %675 = shalt.err (!%p672_p1)
}
  0x22   :  { %33 = dma.hbm_to_vmem [thread:$0]  %s1475_s1, 768, %s28_s24, [#allocation6], %s705_s19, %s705_s19, %s706_s20  }
  0x23   :  { %698 = dma.done.wait [#allocation3], 768  }
  0x24   :  { %699 = vsyncadd [#allocation3], 4294966528 }
  0x25   :  { %700 = dma.done.wait [#allocation6], 768  }
  0x26   :  { %701 = vsyncadd [#allocation6], 4294966528  ;;  %v52_v0 = vlaneseq  ;;  %v759_v6 = vld [vmem:[#allocation5] sm:$0xff]  ;;  %v761_v7 = vld [vmem:[#allocation5 + $0x8] sm:$0xff]  ;;  %v708_v16 = vmov 0.0   ;;  %s709_s1 = smov 127  }
  0x27   :  { %v763_v8 = vld [vmem:[#allocation5 + $0x10] sm:$0xff]  ;;  %vm148_vm0 = vcmp.ne.f32.partialorder %v759_v6, %v759_v6  ;;  %vm149_vm1 = vcmp.ne.f32.partialorder %v761_v7, %v761_v7  ;;  %v773_v12 = vld [vmem:[#allocation5 + $0x28] sm:$0xff]  ;;  %v777_v13 = vld [vmem:[#allocation5 + $0x18] sm:$0xff]  ;;  %s710_s6 = smov 1   ;;  %vm1481_vm10 = vmmov 1   ;;  %v1501_v40 = vmov 0 }
  0x28   :  { %v752_v1 = vshrl.u32 %v52_v0, 7  ;;  %vm1480_vm2 = vcmp.ne.f32.partialorder %v763_v8, %v763_v8  ;;  %v779_v14 = vld [vmem:[#allocation5 + $0x20] sm:$0xff]  ;;  %v785_v17 = vsel %vm148_vm0, 1.0, %v708_v16  ;;  %v791_v18 = vsel %vm149_vm1, 1.0, %v708_v16  ;;  %vm849_vm11 = vmxor %vm148_vm0, %vm1481_vm10  ;;  %v40_v37 = vld [vmem:[#allocation2] sm:$0xff]  ;;  %s712_s13 = smov [#allocation7]  }
  0x29   :  { %vm153_vm3 = vcmp.ne.f32.partialorder %v773_v12, %v773_v12  ;;  %v799_v19 = vsel %vm1480_vm2, 1.0, %v708_v16  ;;  %v600_v20 = vpack.i.bf16 %v791_v18, %v785_v17  ;;  %vm1478_vm4 = vcmp.ne.f32.partialorder %v777_v13, %v777_v13  ;;  %vm866_vm0 = vmxor %vm149_vm1, %vm1481_vm10  ;;  %v41_v51 = vld [vmem:[#allocation2 + $0x8] sm:$0xff]  ;;  %s543_s14 = sshll.u32 %s712_s13, 4  ;;  %s544_s14 = int_to_ptr.vmem [resolvable:$true] %s543_s14 }
  0x2a   :  { %v59_v2 = vcvt.s32.f32 %v752_v1  ;;  %v54_v3 = vadd.s32 8, %v752_v1  ;;  %v757_v4 = vadd.s32 40, %v752_v1  ;;  %v767_v11 = vadd.s32 16, %v752_v1  ;;  %v45_v58 = vld [vmem:[#allocation2 + $0x28] sm:$0xff]  ;;  %s676_s15 = scalar_lea.vmem %s544_s14, 128  ;;  %p681_p3 = scmp.lt.s32.totalorder %s544_s14, %s544_s14 }
  0x2b   :  { %v807_v21 = vsel %vm153_vm3, 1.0, %v708_v16  ;;  %vm1477_vm5 = vcmp.ne.f32.partialorder %v779_v14, %v779_v14  ;;  %v815_v23 = vand.u32 127, %v52_v0  ;;  %601 = vrot.lane.b32.xlu1 %v600_v20, %s709_s1  ;;  %591 = vrot.lane.b32.xlu0 %v600_v20, %s710_s6  ;;  %v823_v24 = vsel %vm1478_vm4, 1.0, %v708_v16  ;;  %p677_p2 = scmp.ne.s32.totalorder %s544_s14, %s676_s15  ;;  %p682_p4 = scmp.lt.s32.totalorder %s676_s15, %s676_s15 }
  0x2c   :  { %v65_v5 = vmul.f32 0.041666668, %v59_v2  ;;  %v60_v9 = vcvt.s32.f32 %v54_v3  ;;  %v64_v10 = vcvt.s32.f32 %v757_v4  ;;  %v605_v22 = vpack.i.bf16 %v799_v19, %v807_v21 }
  0x2d   :  { %v829_v25 = vsel %vm1477_vm5, 1.0, %v708_v16  ;;  %v61_v31 = vcvt.s32.f32 %v767_v11  ;;  %vm1484_vm6 = vcmp.le.s32.totalorder %v815_v23, 16  ;;  %vm1490_vm7 = vcmp.ge.s32.totalorder %v815_v23, 1  ;;  %p683_p5 = por %p682_p4, %p681_p3 }
  0x2e   :  { %v71_v15 = vfloor.f32 %v65_v5  ;;  %v66_v27 = vmul.f32 0.041666668, %v60_v9  ;;  %v70_v28 = vmul.f32 0.041666668, %v64_v10  ;;  %v836_v32 = vpack.i.bf16 %v829_v25, %v823_v24 }
  0x2f   :  { %v841_v33 = vadd.s32 24, %v752_v1  ;;  %606 = vrot.lane.b32.xlu1 %v605_v22, %s709_s1  ;;  %596 = vrot.lane.b32.xlu0 %v605_v22, %s710_s6  ;;  %v67_v38 = vmul.f32 0.041666668, %v61_v31  ;;  %v1503_v41 = vmov 0  ;;  %v166_v43 = vsub.f32 %v40_v37, %v759_v6  ;;  %v42_v6 = vld [vmem:[#allocation2 + $0x10] sm:$0xff]  ;;  %p684_p6 = pnand %p683_p5, %p677_p2 }
  0x30   :  { %v77_v26 = vmul.f32 24.0, %v71_v15  ;;  %v72_v30 = vfloor.f32 %v66_v27  ;;  %v76_v36 = vfloor.f32 %v70_v28  ;;  %v1504_v41 = vsel %vm866_vm0, 4294967295, %v1503_v41 }
  0x31   :  { %v62_v42 = vcvt.s32.f32 %v841_v33  ;;  %v73_v45 = vfloor.f32 %v67_v38  ;;  %v57_v46 = vadd.s32 32, %v752_v1  ;;  %v1505_v47 = vmov 0 }
  0x32   :  { %v83_v29 = vsub.f32 %v59_v2, %v77_v26  ;;  %v78_v35 = vmul.f32 24.0, %v72_v30  ;;  %v82_v44 = vmul.f32 24.0, %v76_v36  ;;  %v1507_v48 = vmov 0  ;;  %v44_v30 = vld [vmem:[#allocation2 + $0x20] sm:$0xff] }
  0x33   :  { %611 = vrot.lane.b32.xlu0 %v836_v32, %s710_s6  ;;  %v68_v49 = vmul.f32 0.041666668, %v62_v42  ;;  %v79_v53 = vmul.f32 24.0, %v73_v45  ;;  %v63_v54 = vcvt.s32.f32 %v57_v46  ;;  %v1509_v55 = vmov 0 }
  0x34   :  { %vm91_vm8 = vcmp.le.f32.partialorder %v83_v29, 16.0  ;;  %vm98_vm9 = vcmp.ge.f32.partialorder %v83_v29, 1.0  ;;  %vm123_vm13 = vcmp.ge.f32.partialorder %v83_v29, 2.0  ;;  %v84_v39 = vsub.f32 %v60_v9, %v78_v35 }
  0x35   :  { %vm104_vm12 = vmand %vm98_vm9, %vm91_vm8  ;;  %v907_v52 = vsub.f32 %v64_v10, %v82_v44  ;;  %v167_v56 = vsub.f32 %v41_v51, %v761_v7  ;;  %v74_v57 = vfloor.f32 %v68_v49  ;;  %v85_v59 = vsub.f32 %v61_v31, %v79_v53 }
  0x36   :  { %vm111_vm14 = vmand %vm104_vm12, %vm1490_vm7  ;;  %vm1483_vm12 = vcmp.ge.s32.totalorder %v815_v23, 2  ;;  %vm92_vm1 = vcmp.le.f32.partialorder %v84_v39, 16.0  ;;  %vm99_vm5 = vcmp.ge.f32.partialorder %v84_v39, 1.0  ;;  %v1511_v60 = vmov 0 }
  0x37   :  { %vm858_vm15 = vmand %vm111_vm14, %vm1484_vm6  ;;  %v69_v61 = vmul.f32 0.041666668, %v63_v54  ;;  %v171_v0 = vsub.f32 %v45_v58, %v773_v12  ;;  %v80_v2 = vmul.f32 24.0, %v74_v57  ;;  %v1518_v3 = vmov 0 }
  0x38   :  { %v1502_v40 = vsel %vm858_vm15, 4294967295, %v1501_v40  ;;  %vm129_vm9 = vmand %vm123_vm13, %vm91_vm8  ;;  %v1524_v10 = vmov 0  ;;  %v168_v12 = vsub.f32 %v42_v6, %v763_v8  ;;  %v1528_v15 = vmov 0 }
  0x39   :  { %vm136_vm14 = vmand %vm129_vm9, %vm1483_vm12  ;;  %v75_v4 = vfloor.f32 %v69_v61  ;;  %v86_v7 = vsub.f32 %v62_v42, %v80_v2  ;;  %v1535_v27 = vmov 0  ;;  %v170_v31 = vsub.f32 %v44_v30, %v779_v14 }
  0x3a   :  { %vm881_vm4 = vmand %vm136_vm14, %vm1484_vm6  ;;  %vm124_vm14 = vcmp.ge.f32.partialorder %v84_v39, 2.0 }
  0x3b   :  { %v1506_v47 = vsel %vm881_vm4, 4294967295, %v1505_v47  ;;  %vm1479_vm8 = vmand %vm849_vm11, %vm858_vm15  ;;  %vm100_vm4 = vcmp.ge.f32.partialorder %v85_v59, 1.0  ;;  %v81_v11 = vmul.f32 24.0, %v75_v4 }
  0x3c   :  { %vm893_vm13 = vmxor %vm153_vm3, %vm1481_vm10  ;;  %v902_v50 = vsel %vm1479_vm8, %v166_v43, 0.0  ;;  %vm1487_vm10 = vcmp.le.f32.partialorder %v907_v52, 16.0 }
  0x3d   :  { %v1508_v48 = vsel %vm893_vm13, 4294967295, %v1507_v48  ;;  %vm105_vm9 = vmand %vm99_vm5, %vm92_vm1  ;;  %348 = vrot.lane.b32.xlu1 %v902_v50, %s710_s6  ;;  %v87_v20 = vsub.f32 %v63_v54, %v81_v11  ;;  %v178_v37 = vmul.f32 %v902_v50, %v902_v50 }
  0x3e   :  { %vm112_vm3 = vmand %vm105_vm9, %vm1490_vm7  ;;  %vm103_vm9 = vcmp.ge.f32.partialorder %v907_v52, 1.0 }
  0x3f   :  { %vm915_vm8 = vmand %vm112_vm3, %vm1484_vm6 }
  0x40   :  { %v1510_v55 = vsel %vm915_vm8, 4294967295, %v1509_v55  ;;  %vm130_vm5 = vmand %vm124_vm14, %vm92_vm1  ;;  %vm1513_vm14 = vmmov 1  }
  0x41   :  { %vm137_vm2 = vmand %vm130_vm5, %vm1483_vm12  ;;  %360 = vrot.lane.b32.xlu1 %v902_v50, %s709_s1  ;;  %vm1514_vm5 = vcmp.ne.f32.partialorder %v763_v8, %v763_v8  ;;  %v43_v8 = vld [vmem:[#allocation2 + $0x18] sm:$0xff] }
  0x42   :  { %vm927_vm3 = vmand %vm137_vm2, %vm1484_vm6  ;;  %vm93_vm6 = vcmp.le.f32.partialorder %v85_v59, 16.0  ;;  %v169_v28 = vsub.f32 %v43_v8, %v777_v13 }
  0x43   :  { %v1512_v60 = vsel %vm927_vm3, 4294967295, %v1511_v60  ;;  %vm1486_vm1 = vmand %vm866_vm0, %vm915_vm8  ;;  %vm1517_vm3 = vcmp.le.s32.totalorder %v815_v23, 16  ;;  %vm101_vm8 = vcmp.ge.f32.partialorder %v86_v7, 1.0 }
  0x44   :  { %vm941_vm12 = vmxor %vm1514_vm5, %vm1513_vm14  ;;  %v950_v63 = vsel %vm1486_vm1, %v167_v56, 0.0  ;;  %vm1520_vm1 = vcmp.ne.f32.partialorder %v777_v13, %v777_v13 }
  0x45   :  { %vm109_vm2 = vmand %vm103_vm9, %vm1487_vm10  ;;  %350 = vrot.lane.b32.xlu0 %v950_v63, %s710_s6  ;;  %v179_v38 = vmul.f32 %v950_v63, %v950_v63 }
  0x46   :  { %vm116_vm5 = vmand %vm109_vm2, %vm1490_vm7 }
  0x47   :  { %vm961_vm15 = vmand %vm116_vm5, %vm1517_vm3  ;;  %vm125_vm3 = vcmp.ge.f32.partialorder %v85_v59, 2.0  ;;  %v184_v42 = vadd.f32 %v179_v38, %v178_v37 }
  0x48   :  { %v1519_v3 = vsel %vm961_vm15, 4294967295, %v1518_v3  ;;  %vm1488_vm9 = vmand %vm893_vm13, %vm961_vm15  ;;  %vm94_vm13 = vcmp.le.f32.partialorder %v86_v7, 16.0 }
  0x49   :  { %v974_v5 = vsel %vm1488_vm9, %v171_v0, 0.0  ;;  %vm106_vm2 = vmand %vm100_vm4, %vm93_vm6  ;;  %vm1523_vm9 = vcmp.le.s32.totalorder %v815_v23, 16 }
  0x4a   :  { %358 = vrot.lane.b32.xlu0 %v974_v5, %s710_s6  ;;  %vm113_vm5 = vmand %vm106_vm2, %vm1490_vm7  ;;  %vm1526_vm2 = vcmp.ge.s32.totalorder %v815_v23, 2 }
  0x4b   :  { %vm985_vm10 = vmxor %vm1520_vm1, %vm1513_vm14 }
  0x4c   :  { %vm991_vm15 = vmand %vm113_vm5, %vm1523_vm9  ;;  %vm126_vm5 = vcmp.ge.f32.partialorder %v86_v7, 2.0 }
  0x4d   :  { %v1525_v10 = vsel %vm991_vm15, 4294967295, %v1524_v10  ;;  %vm131_vm4 = vmand %vm125_vm3, %vm93_vm6 }
  0x4e   :  { %vm138_vm7 = vmand %vm131_vm4, %vm1526_vm2  ;;  %362 = vrot.lane.b32.xlu0 %v950_v63, %s709_s1  ;;  %vm1533_vm4 = vcmp.ge.s32.totalorder %v815_v23, 1 }
  0x4f   :  { %vm1527_vm1 = vmmov %vm1523_vm9  ;;  %vm1530_vm9 = vcmp.ne.f32.partialorder %v779_v14, %v779_v14 }
  0x50   :  { %vm1001_vm0 = vmand %vm138_vm7, %vm1527_vm1 }
  0x51   :  { %v1529_v15 = vsel %vm1001_vm0, 4294967295, %v1528_v15  ;;  %vm1494_vm6 = vmand %vm941_vm12, %vm991_vm15  ;;  %vm1537_vm0 = vcmp.ge.s32.totalorder %v815_v23, 2 }
  0x52   :  { %vm1015_vm3 = vmxor %vm1530_vm9, %vm1513_vm14  ;;  %v1024_v26 = vsel %vm1494_vm6, %v168_v12, 0.0  ;;  %370 = vrot.lane.b32.xlu0 %v974_v5, %s709_s1  ;;  %vm95_vm9 = vcmp.le.f32.partialorder %v87_v20, 16.0  ;;  %vm102_vm6 = vcmp.ge.f32.partialorder %v87_v20, 1.0 }
  0x53   :  { %vm107_vm7 = vmand %vm101_vm8, %vm94_vm13  ;;  %352 = vrot.lane.b32.xlu1 %v1024_v26, %s710_s6  ;;  %v180_v39 = vmul.f32 %v1024_v26, %v1024_v26 }
  0x54   :  { %vm114_vm2 = vmand %vm107_vm7, %vm1533_vm4 }
  0x55   :  { %vm1534_vm14 = vmmov %vm1527_vm1  ;;  %v185_v44 = vadd.f32 %v184_v42, %v180_v39 }
  0x56   :  { %vm1035_vm1 = vmand %vm114_vm2, %vm1534_vm14 }
  0x57   :  { %v1536_v27 = vsel %vm1035_vm1, 4294967295, %v1535_v27  ;;  %vm132_vm8 = vmand %vm126_vm5, %vm94_vm13  ;;  %364 = vrot.lane.b32.xlu1 %v1024_v26, %s709_s1  ;;  %vm127_vm13 = vcmp.ge.f32.partialorder %v87_v20, 2.0 }
  0x58   :  { %vm1043_vm15 = vmand %vm132_vm8, %vm1537_vm0  ;;  %vm128_vm8 = vcmp.ge.f32.partialorder %v907_v52, 2.0 }
  0x59   :  { %vm1496_vm7 = vmand %vm985_vm10, %vm1035_vm1  ;;  %vm1547_vm1 = vcmp.le.s32.totalorder %v815_v23, 16 }
  0x5a   :  { %v1058_v13 = vsel %vm1496_vm7, %v169_v28, 0.0  ;;  %vm108_vm0 = vmand %vm102_vm6, %vm95_vm9 }
  0x5b   :  { %354 = vrot.lane.b32.xlu0 %v1058_v13, %s710_s6  ;;  %vm1540_vm5 = vmmov %vm1533_vm4  ;;  %616 = vrot.lane.b32.xlu1 %v836_v32, %s709_s1  ;;  %v181_v43 = vmul.f32 %v1058_v13, %v1058_v13 }
  0x5c   :  { %vm115_vm4 = vmand %vm108_vm0, %vm1540_vm5  ;;  %vm1544_vm5 = vcmp.le.f32.partialorder %v907_v52, 16.0 }
  0x5d   :  { %vm1541_vm2 = vmmov %vm1534_vm14  ;;  %v186_v51 = vadd.f32 %v185_v44, %v181_v43 }
  0x5e   :  { %vm1068_vm14 = vmand %vm115_vm4, %vm1541_vm2 }
  0x5f   :  { %vm133_vm6 = vmand %vm127_vm13, %vm95_vm9  ;;  %vm1545_vm9 = vcmp.ge.s32.totalorder %v815_v23, 2  ;;  %366 = vrot.lane.b32.xlu1 %v1058_v13, %s709_s1 }
  0x60   :  { %vm1498_vm0 = vmand %vm1015_vm3, %vm1068_vm14 }
  0x61   :  { %v1085_v14 = vsel %vm1498_vm0, %v170_v31, 0.0  ;;  %vm134_vm4 = vmand %vm128_vm8, %vm1544_vm5 }
  0x62   :  { %356 = vrot.lane.b32.xlu0 %v1085_v14, %s710_s6  ;;  %vm140_vm13 = vmand %vm133_vm6, %vm1545_vm9  ;;  %v182_v49 = vmul.f32 %v1085_v14, %v1085_v14 }
  0x63   :  { %vm1546_vm2 = vmmov %vm1545_vm9  ;;  %368 = vrot.lane.b32.xlu1 %v1085_v14, %s709_s1 }
  0x64   :  { %vm141_vm7 = vmand %vm134_vm4, %vm1546_vm2  ;;  %vm1559_vm4 = vnez %v1510_v55  ;;  %vm1561_vm2 = vnez %v1525_v10 }
  0x65   :  { %vm1101_vm0 = vmand %vm1043_vm15, %vm1547_vm1  ;;  %vm1556_vm15 = vnez %v1502_v40  ;;  %v183_v40 = vmul.f32 %v974_v5, %v974_v5 }
  0x66   :  { %vm1550_vm8 = vmmov %vm1547_vm1 }
  0x67   :  { %vm1107_vm5 = vmand %vm140_vm13, %vm1550_vm8 }
  0x68   :  { %vm1553_vm6 = vmmov %vm1547_vm1 }
  0x69   :  { %vm1113_vm9 = vmand %vm141_vm7, %vm1553_vm6  ;;  %vm1558_vm7 = vnez %v1504_v41  ;;  %v187_v41 = vadd.f32 %v186_v51, %v182_v49 }
  0x6a   :  { %vm1557_vm1 = vmand %vm849_vm11, %vm1556_vm15  ;;  %vm1563_vm11 = vnez %v1536_v27  ;;  %vm1566_vm15 = vnez %v1508_v48 }
  0x6b   :  { %v553_v45 = vsel %vm1557_vm1, 1.0, %v708_v16  ;;  %vm1560_vm13 = vmand %vm1558_vm7, %vm1559_vm4  ;;  %v188_v55 = vadd.f32 %v187_v41, %v183_v40  ;;  %vm1567_vm1 = vnez %v1519_v3  ;;  %vm1569_vm4 = vnez %v1512_v60 }
  0x6c   :  { %v554_v46 = vsel %vm1560_vm13, 1.0, %v708_v16  ;;  %vm1562_vm8 = vmand %vm941_vm12, %vm1561_vm2 }
  0x6d   :  { %v210_v52 = vadd.f32 %v554_v46, %v553_v45  ;;  %v555_v34 = vsel %vm1562_vm8, 1.0, %v708_v16  ;;  %vm1564_vm6 = vmand %vm985_vm10, %vm1563_vm11  ;;  %vm278_vm10 = vcmp.lt.s32.totalorder %v752_v1, 1  ;;  %vm1572_vm8 = vnez %v1506_v47 }
  0x6e   :  { %v556_v54 = vsel %vm1564_vm6, 1.0, %v708_v16  ;;  %vm1565_vm12 = vmand %vm1015_vm3, %vm1068_vm14  ;;  %vm297_vm3 = vcmp.lt.s32.totalorder %v752_v1, 7  ;;  %v385_v47 = vmul.f32 2.0, %v950_v63 }
  0x6f   :  { %v211_v53 = vadd.f32 %v555_v34, %v210_v52  ;;  %v557_v57 = vsel %vm1565_vm12, 1.0, %v708_v16  ;;  %vm1568_vm7 = vmand %vm1566_vm15, %vm1567_vm1  ;;  %v384_v52 = vmul.f32 2.0, %v902_v50  ;;  %v1230_v50 = vmul.f32 2.0, %v1085_v14 }
  0x70   :  { %v558_v59 = vsel %vm1568_vm7, 1.0, %v708_v16  ;;  %vm1575_vm7 = vnez %v1529_v15 }
  0x71   :  { %v212_v56 = vadd.f32 %v556_v54, %v211_v53 }
  0x73   :  { %v213_v58 = vadd.f32 %v557_v57, %v212_v56  ;;  %v389_v57 = vmul.f32 2.0, %v974_v5 }
  0x75   :  { %v214_v61 = vadd.f32 %v558_v59, %v213_v58  ;;  %v386_v59 = vmul.f32 2.0, %v1024_v26 }
  0x81   :  { %189 = vadd.xlane.f32.xlu0 %v188_v55 }
  0x87   :  { %215 = vadd.xlane.f32.xlu1 %v214_v61  ;;  %v1227_v61 = vmul.f32 2.0, %v1058_v13 }
  0x9d   :  { %v602_v62 = vpop.permute.xlu1 %601  ;;  %v592_v0 = vpop.permute.xlu0 %591 }
  0x9e   :  { %v620_v2 = vadd.high.f32.bf16 %v791_v18, %v592_v0  ;;  %v621_v4 = vadd.low.f32.bf16 %v785_v17, %v592_v0 }
  0xa0   :  { %v622_v7 = vadd.high.f32.bf16 %v620_v2, %v602_v62  ;;  %v1169_v9 = vadd.low.f32.bf16 %v621_v4, %v602_v62 }
  0xa1   :  { %v597_v6 = vpop.permute.xlu0 %596  ;;  %v607_v10 = vpop.permute.xlu1 %606 }
  0xa2   :  { %v273_v48 = vrot.slane %v622_v7, 7  ;;  %v272_v3 = vrot.slane %v1169_v9, 7  ;;  %v624_v11 = vadd.high.f32.bf16 %v799_v19, %v597_v6  ;;  %v625_v12 = vadd.low.f32.bf16 %v807_v21, %v597_v6 }
  0xa3   :  { %v292_v20 = vrot.slane %v622_v7, 1  ;;  %v291_v22 = vrot.slane %v1169_v9, 1 }
  0xa4   :  { %v283_v8 = vsel %vm278_vm10, %v272_v3, %v273_v48  ;;  %v1177_v18 = vadd.high.f32.bf16 %v624_v11, %v607_v10  ;;  %v1179_v17 = vadd.low.f32.bf16 %v625_v12, %v607_v10 }
  0xa5   :  { %v286_v29 = vadd.f32 %v622_v7, %v283_v8  ;;  %v1193_v30 = vpop.permute.xlu0 %611  ;;  %v302_v38 = vsel %vm297_vm3, %v291_v22, %v292_v20 }
  0xa6   :  { %v293_v27 = vrot.slane %v1177_v18, 1  ;;  %v277_v28 = vrot.slane %v1179_v17, 7  ;;  %v274_v40 = vrot.slane %v1177_v18, 7  ;;  %v296_v58 = vrot.slane %v1179_v17, 1 }
  0xa7   :  { %v628_v63 = vadd.high.f32.bf16 %v829_v25, %v1193_v30  ;;  %v629_v62 = vadd.low.f32.bf16 %v823_v24, %v1193_v30 }
  0xa8   :  { %v284_v19 = vsel %vm278_vm10, %v277_v28, %v272_v3  ;;  %v301_v21 = vsel %vm297_vm3, %v292_v20, %v293_v27  ;;  %v282_v5 = vsel %vm278_vm10, %v273_v48, %v274_v40  ;;  %v1250_v48 = vsel %vm297_vm3, %v296_v58, %v291_v22 }
  0xa9   :  { %v285_v31 = vadd.f32 %v1169_v9, %v284_v19  ;;  %v305_v37 = vadd.f32 %v301_v21, %v286_v29  ;;  %v1253_v12 = vadd.f32 %v1177_v18, %v282_v5 }
  0xab   :  { %v304_v39 = vadd.f32 %v302_v38, %v285_v31  ;;  %vm311_vm14 = vcmp.lt.f32.partialorder %v305_v37, 0.5 }
  0xac   :  { %vm1200_vm13 = vmand %vm311_vm14, %vm1569_vm4 }
  0xad   :  { %vm310_vm2 = vcmp.lt.f32.partialorder %v304_v39, 0.5  ;;  %v566_v60 = vsel %vm1200_vm13, 1.0, %v708_v16 }
  0xae   :  { %vm1206_vm11 = vmand %vm310_vm2, %vm1572_vm8 }
  0xaf   :  { %v349_v33 = vpop.permute.xlu1 %348  ;;  %v565_v46 = vsel %vm1206_vm11, 1.0, %v708_v16 }
  0xb0   :  { %v1216_v49 = vadd.f32 %v566_v60, %v565_v46 }
  0xb3   :  { %v361_v45 = vpop.permute.xlu1 %360 }
  0xb4   :  { %v378_v51 = vadd.f32 %v361_v45, %v349_v33  ;;  %v372_v41 = vsub.f32 %v349_v33, %v361_v45 }
  0xb6   :  { %v1221_v53 = vadd.f32 %v384_v52, %v378_v51  ;;  %v396_v26 = vrot.slane %v372_v41, 7  ;;  %v420_v8 = vrot.slane %v372_v41, 1  ;;  %v408_v33 = vmul.f32 2.0, %v372_v41 }
  0xb7   :  { %v351_v43 = vpop.permute.xlu0 %350 }
  0xb8   :  { %v464_v13 = vrot.slane %v1221_v53, 7  ;;  %v476_v14 = vrot.slane %v1221_v53, 1 }
  0xbc   :  { %v359_v34 = vpop.permute.xlu0 %358 }
  0xc0   :  { %v363_v54 = vpop.permute.xlu0 %362 }
  0xc1   :  { %v373_v55 = vsub.f32 %v351_v43, %v363_v54  ;;  %v379_v56 = vadd.f32 %v363_v54, %v351_v43 }
  0xc3   :  { %v391_v2 = vadd.f32 %v385_v47, %v379_v56  ;;  %v397_v4 = vrot.slane %v373_v55, 7  ;;  %v409_v7 = vmul.f32 2.0, %v373_v55  ;;  %v421_v9 = vrot.slane %v373_v55, 1 }
  0xc4   :  { %v371_v6 = vpop.permute.xlu0 %370 }
  0xc5   :  { %v353_v0 = vpop.permute.xlu1 %352  ;;  %v465_v25 = vrot.slane %v391_v2, 7  ;;  %v477_v10 = vrot.slane %v391_v2, 1  ;;  %v406_v24 = vsel %vm278_vm10, %v396_v26, %v397_v4  ;;  %v1244_v3 = vsub.f32 %v359_v34, %v371_v6 }
  0xc6   :  { %v383_v11 = vadd.f32 %v371_v6, %v359_v34  ;;  %v415_v37 = vadd.f32 %v409_v7, %v406_v24  ;;  %v430_v38 = vsel %vm297_vm3, %v420_v8, %v421_v9 }
  0xc7   :  { %v1257_v20 = vsel %vm278_vm10, %v464_v13, %v465_v25  ;;  %v486_v29 = vsel %vm297_vm3, %v476_v14, %v477_v10  ;;  %v401_v22 = vrot.slane %v1244_v3, 7  ;;  %v425_v39 = vrot.slane %v1244_v3, 1 }
  0xc8   :  { %v1263_v31 = vadd.f32 %v389_v57, %v383_v11  ;;  %v1272_v60 = vmul.f32 2.0, %v1244_v3 }
  0xc9   :  { %v365_v19 = vpop.permute.xlu1 %364  ;;  %v407_v52 = vsel %vm278_vm10, %v401_v22, %v396_v26  ;;  %v1287_v57 = vsel %vm297_vm3, %v425_v39, %v420_v8 }
  0xca   :  { %v1261_v21 = vsub.f32 %v353_v0, %v365_v19  ;;  %v380_v30 = vadd.f32 %v365_v19, %v353_v0  ;;  %v469_v34 = vrot.slane %v1263_v31, 7  ;;  %v481_v47 = vrot.slane %v1263_v31, 1 }
  0xcb   :  { %v414_v2 = vadd.f32 %v408_v33, %v407_v52 }
  0xcc   :  { %v392_v43 = vadd.f32 %v386_v59, %v380_v30  ;;  %v398_v45 = vrot.slane %v1261_v21, 7  ;;  %v422_v46 = vrot.slane %v1261_v21, 1  ;;  %v410_v51 = vmul.f32 2.0, %v1261_v21 }
  0xcd   :  { %v617_v41 = vpop.permute.xlu1 %616  ;;  %v355_v53 = vpop.permute.xlu0 %354  ;;  %v475_v5 = vsel %vm278_vm10, %v469_v34, %v464_v13  ;;  %v432_v24 = vadd.f32 %v430_v38, %v414_v2 }
  0xce   :  { %v429_v54 = vsel %vm297_vm3, %v421_v9, %v422_v46  ;;  %v466_v55 = vrot.slane %v392_v43, 7  ;;  %v478_v56 = vrot.slane %v392_v43, 1  ;;  %v405_v59 = vsel %vm278_vm10, %v397_v4, %v398_v45 }
  0xcf   :  { %v433_v0 = vadd.f32 %v429_v54, %v415_v37  ;;  %v488_v7 = vsub.f32 %v475_v5, %v486_v29  ;;  %v416_v8 = vadd.f32 %v410_v51, %v405_v59  ;;  %v630_v13 = vadd.high.f32.bf16 %v628_v63, %v617_v41 }
  0xd0   :  { %v1297_v26 = vsel %vm278_vm10, %v465_v25, %v466_v55  ;;  %v1301_v6 = vsel %vm297_vm3, %v477_v10, %v478_v56  ;;  %v631_v25 = vadd.low.f32.bf16 %v629_v62, %v617_v41  ;;  %v438_v10 = vsel %vm1206_vm11, %v432_v24, 0.0 }
  0xd1   :  { %v489_v9 = vsub.f32 %v1257_v20, %v1301_v6  ;;  %v367_v4 = vpop.permute.xlu1 %366  ;;  %v1307_v11 = vsel %vm1200_vm13, %v433_v0, 0.0  ;;  %v1315_v29 = vsel %vm297_vm3, %v481_v47, %v476_v14  ;;  %v1319_v33 = vsel %vm1206_vm11, %v488_v7, 0.0 }
  0xd2   :  { %v375_v19 = vsub.f32 %v355_v53, %v367_v4  ;;  %v381_v21 = vadd.f32 %v367_v4, %v355_v53  ;;  %v276_v37 = vrot.slane %v630_v13, 7  ;;  %v295_v38 = vrot.slane %v630_v13, 1 }
  0xd3   :  { %v275_v43 = vrot.slane %v631_v25, 7  ;;  %v294_v51 = vrot.slane %v631_v25, 1  ;;  %v500_v1 = vmul.f32 %v1319_v33, %v1319_v33 }
  0xd4   :  { %v357_v30 = vpop.permute.xlu0 %356  ;;  %v1322_v63 = vadd.f32 %v1227_v61, %v381_v21  ;;  %v399_v62 = vrot.slane %v375_v19, 7  ;;  %v411_v52 = vmul.f32 2.0, %v375_v19  ;;  %v423_v41 = vrot.slane %v375_v19, 1 }
  0xd5   :  { %v369_v53 = vpop.permute.xlu1 %368  ;;  %v280_v0 = vsel %vm278_vm10, %v275_v43, %v276_v37  ;;  %v281_v61 = vsel %vm278_vm10, %v274_v40, %v275_v43  ;;  %v300_v2 = vsel %vm297_vm3, %v293_v27, %v294_v51 }
  0xd6   :  { %v404_v54 = vsel %vm278_vm10, %v398_v45, %v399_v62  ;;  %v467_v14 = vrot.slane %v1322_v63, 7  ;;  %v479_v44 = vrot.slane %v1322_v63, 1  ;;  %v376_v59 = vsub.f32 %v357_v30, %v369_v53 }
  0xd7   :  { %v417_v5 = vadd.f32 %v411_v52, %v404_v54  ;;  %v288_v45 = vadd.f32 %v631_v25, %v281_v61  ;;  %v289_v7 = vadd.f32 %v630_v13, %v280_v0  ;;  %v428_v4 = vsel %vm297_vm3, %v422_v46, %v423_v41 }
  0xd8   :  { %v1344_v24 = vsel %vm278_vm10, %v466_v55, %v467_v14  ;;  %v1348_v40 = vsel %vm297_vm3, %v478_v56, %v479_v44  ;;  %v382_v18 = vadd.f32 %v369_v53, %v357_v30  ;;  %v400_v19 = vrot.slane %v376_v59, 7 }
  0xd9   :  { %v412_v21 = vmul.f32 2.0, %v376_v59  ;;  %v490_v27 = vsub.f32 %v1297_v26, %v1348_v40  ;;  %v424_v13 = vrot.slane %v376_v59, 1  ;;  %v279_v46 = vsel %vm278_vm10, %v276_v37, %v277_v28 }
  0xda   :  { %v298_v55 = vsel %vm297_vm3, %v295_v38, %v296_v58  ;;  %v394_v56 = vadd.f32 %v1230_v50, %v382_v18  ;;  %v403_v25 = vsel %vm278_vm10, %v399_v62, %v400_v19  ;;  %v290_v30 = vadd.f32 %v1179_v17, %v279_v46 }
  0xdb   :  { %v299_v26 = vsel %vm297_vm3, %v294_v51, %v295_v38  ;;  %v418_v43 = vadd.f32 %v412_v21, %v403_v25  ;;  %v306_v52 = vadd.f32 %v300_v2, %v1253_v12  ;;  %v308_v28 = vadd.f32 %v298_v55, %v289_v7 }
  0xdc   :  { %v307_v53 = vadd.f32 %v299_v26, %v288_v45  ;;  %v468_v37 = vrot.slane %v394_v56, 7  ;;  %v480_v54 = vrot.slane %v394_v56, 1  ;;  %v309_v59 = vadd.f32 %v1250_v48, %v290_v30 }
  0xdd   :  { %v402_v58 = vsel %vm278_vm10, %v400_v19, %v401_v22  ;;  %vm312_vm6 = vcmp.lt.f32.partialorder %v306_v52, 0.5  ;;  %vm314_vm15 = vcmp.lt.f32.partialorder %v308_v28, 0.5  ;;  %v426_v48 = vsel %vm297_vm3, %v424_v13, %v425_v39 }
  0xde   :  { %vm313_vm12 = vcmp.lt.f32.partialorder %v307_v53, 0.5  ;;  %v419_v17 = vadd.f32 %v1272_v60, %v402_v58  ;;  %v483_v50 = vsel %vm297_vm3, %v479_v44, %v480_v54  ;;  %vm315_vm1 = vcmp.lt.f32.partialorder %v309_v59, 0.5  ;;  %vm1377_vm14 = vmand %vm312_vm6, %vm1575_vm7 }
  0xdf   :  { %v427_v22 = vsel %vm297_vm3, %v423_v41, %v424_v13  ;;  %vm1389_vm4 = vmand %vm313_vm12, %vm1101_vm0  ;;  %v567_v15 = vsel %vm1377_vm14, 1.0, %v708_v16  ;;  %v434_v38 = vadd.f32 %v428_v4, %v416_v8  ;;  %v436_v51 = vadd.f32 %v426_v48, %v418_v43 }
  0xe0   :  { %v435_v62 = vadd.f32 %v427_v22, %v417_v5  ;;  %vm1398_vm2 = vmand %vm314_vm15, %vm1107_vm5  ;;  %v568_v32 = vsel %vm1389_vm4, 1.0, %v708_v16  ;;  %v335_v39 = vadd.f32 %v567_v15, %v1216_v49  ;;  %v437_v41 = vadd.f32 %v1287_v57, %v419_v17 }
  0xe1   :  { %v444_v44 = vmul.f32 %v438_v10, %v438_v10  ;;  %vm1409_vm0 = vmand %vm315_vm1, %vm1113_vm9  ;;  %v440_v35 = vsel %vm1377_vm14, %v434_v38, 0.0  ;;  %v442_v61 = vsel %vm1398_vm2, %v436_v51, 0.0  ;;  %v445_v49 = vmul.f32 %v1307_v11, %v1307_v11 }
  0xe2   :  { %v441_v0 = vsel %vm1389_vm4, %v435_v62, 0.0  ;;  %v569_v36 = vsel %vm1398_vm2, 1.0, %v708_v16  ;;  %v336_v57 = vadd.f32 %v568_v32, %v335_v39  ;;  %v443_v10 = vsel %vm1409_vm0, %v437_v41, 0.0 }
  0xe3   :  { %v446_v2 = vmul.f32 %v440_v35, %v440_v35  ;;  %v570_v5 = vsel %vm1409_vm0, 1.0, %v708_v16  ;;  %v447_v45 = vmul.f32 %v441_v0, %v441_v0  ;;  %v448_v7 = vmul.f32 %v442_v61, %v442_v61 }
  0xe4   :  { %v450_v4 = vadd.f32 %v445_v49, %v444_v44  ;;  %v337_v40 = vadd.f32 %v569_v36, %v336_v57  ;;  %v470_v11 = vsel %vm278_vm10, %v468_v37, %v469_v34  ;;  %v471_v18 = vsel %vm278_vm10, %v467_v14, %v468_v37 }
  0xe5   :  { %v482_v19 = vsel %vm297_vm3, %v480_v54, %v481_v47  ;;  %v491_v21 = vsub.f32 %v1344_v24, %v483_v50  ;;  %v493_v46 = vsub.f32 %v470_v11, %v1315_v29  ;;  %v495_v34 = vsel %vm1200_vm13, %v489_v9, 0.0 }
  0xe6   :  { %v451_v16 = vadd.f32 %v450_v4, %v446_v2  ;;  %v492_v13 = vsub.f32 %v471_v18, %v482_v19  ;;  %v338_v55 = vadd.f32 %v570_v5, %v337_v40  ;;  %v496_v63 = vsel %vm1377_vm14, %v490_v27, 0.0 }
  0xe7   :  { %v497_v47 = vsel %vm1389_vm4, %v491_v21, 0.0  ;;  %v499_v14 = vsel %vm1409_vm0, %v493_v46, 0.0  ;;  %v501_v20 = vmul.f32 %v495_v34, %v495_v34  ;;  %v502_v42 = vmul.f32 %v496_v63, %v496_v63 }
  0xe8   :  { %v452_v31 = vadd.f32 %v451_v16, %v447_v45  ;;  %v498_v29 = vsel %vm1398_vm2, %v492_v13, 0.0  ;;  %339 = vadd.xlane.f32.xlu0 %v338_v55  ;;  %v449_v6 = vmul.f32 %v443_v10, %v443_v10  ;;  %v503_v24 = vmul.f32 %v497_v47, %v497_v47 }
  0xe9   :  { %v506_v27 = vadd.f32 %v501_v20, %v500_v1  ;;  %v504_v33 = vmul.f32 %v498_v29, %v498_v29  ;;  %v505_v26 = vmul.f32 %v499_v14, %v499_v14  ;;  %vm521_vm5 = vcmp.eq.s32.totalorder %v815_v23, 0 }
  0xea   :  { %v453_v9 = vadd.f32 %v452_v31, %v448_v7  ;;  %vm524_vm9 = vcmp.eq.s32.totalorder %v815_v23, 1  ;;  %vm528_vm10 = vcmp.eq.s32.totalorder %v815_v23, 2  ;;  %vm532_vm3 = vcmp.eq.s32.totalorder %v815_v23, 3 }
  0xeb   :  { %v507_v25 = vadd.f32 %v506_v27, %v502_v42 }
  0xec   :  { %v454_v56 = vadd.f32 %v453_v9, %v449_v6 }
  0xed   :  { %v508_v30 = vadd.f32 %v507_v25, %v503_v24 }
  0xee   :  { %455 = vadd.xlane.f32.xlu0 %v454_v56 }
  0xef   :  { %v509_v43 = vadd.f32 %v508_v30, %v504_v33 }
  0xf1   :  { %v510_v52 = vadd.f32 %v509_v43, %v505_v26 }
  0xf3   :  { %511 = vadd.xlane.f32.xlu1 %v510_v52 }
 0x10e   :  { %v190_v53 = vpop.xlane.xlu0 %189 }
 0x10f   :  { %v191_v28 = vrot.slane %v190_v53, 4 }
 0x111   :  { %v192_v37 = vadd.f32 %v191_v28, %v190_v53 }
 0x113   :  { %v193_v54 = vrot.slane %v192_v37, 2 }
 0x114   :  { %v216_v17 = vpop.xlane.xlu1 %215 }
 0x115   :  { %v194_v59 = vadd.f32 %v193_v54, %v192_v37  ;;  %v217_v50 = vrot.slane %v216_v17, 4 }
 0x117   :  { %v195_v58 = vrot.slane %v194_v59, 1  ;;  %v218_v48 = vadd.f32 %v217_v50, %v216_v17 }
 0x119   :  { %v196_v12 = vadd.f32 %v195_v58, %v194_v59  ;;  %v219_v22 = vrot.slane %v218_v48, 2 }
 0x11b   :  { %571 = vpush %v196_v12  ;;  %v220_v60 = vadd.f32 %v219_v22, %v218_v48 }
 0x11d   :  { %v221_v15 = vrot.slane %v220_v60, 1 }
 0x11f   :  { %v222_v38 = vadd.f32 %v221_v15, %v220_v60 }
 0x121   :  { %573 = vpush %v222_v38 }
 0x14c   :  { %s572_s7 = spop %571 }
 0x14d   :  { %v522_v11 = vstv %s572_s7 }
 0x14e   :  { %v523_v19 = vsel %vm521_vm5, %v522_v11, 0.0 }
 0x152   :  { %s574_s8 = spop %573 }
 0x153   :  { %v525_v18 = vstv %s574_s8 }
 0x154   :  { %v526_v16 = vsel %vm524_vm9, %v525_v18, 0.0 }
 0x155   :  { %v527_v21 = vadd.f32 %v526_v16, %v523_v19 }
 0x175   :  { %v340_v62 = vpop.xlane.xlu0 %339 }
 0x176   :  { %v341_v51 = vrot.slane %v340_v62, 4 }
 0x178   :  { %v342_v3 = vadd.f32 %v341_v51, %v340_v62 }
 0x17a   :  { %v343_v32 = vrot.slane %v342_v3, 2 }
 0x17b   :  { %v456_v39 = vpop.xlane.xlu0 %455 }
 0x17c   :  { %v457_v41 = vrot.slane %v456_v39, 4  ;;  %v344_v44 = vadd.f32 %v343_v32, %v342_v3 }
 0x17e   :  { %v458_v8 = vadd.f32 %v457_v41, %v456_v39  ;;  %v345_v35 = vrot.slane %v344_v44, 1 }
 0x180   :  { %v459_v0 = vrot.slane %v458_v8, 2  ;;  %v346_v61 = vadd.f32 %v345_v35, %v344_v44  ;;  %v512_v36 = vpop.xlane.xlu1 %511 }
 0x181   :  { %v513_v57 = vrot.slane %v512_v36, 4 }
 0x182   :  { %v460_v49 = vadd.f32 %v459_v0, %v458_v8  ;;  %575 = vpush %v346_v61 }
 0x183   :  { %v514_v2 = vadd.f32 %v513_v57, %v512_v36 }
 0x184   :  { %v461_v10 = vrot.slane %v460_v49, 1 }
 0x185   :  { %v515_v45 = vrot.slane %v514_v2, 2 }
 0x186   :  { %v462_v5 = vadd.f32 %v461_v10, %v460_v49 }
 0x187   :  { %v516_v7 = vadd.f32 %v515_v45, %v514_v2 }
 0x188   :  { %577 = vpush %v462_v5 }
 0x189   :  { %v517_v4 = vrot.slane %v516_v7, 1 }
 0x18b   :  { %v518_v40 = vadd.f32 %v517_v4, %v516_v7 }
 0x18d   :  { %579 = vpush %v518_v40 }
 0x1b3   :  { %s576_s9 = spop %575 }
 0x1b4   :  { %v533_v13 = vstv %s576_s9 }
 0x1b5   :  { %v534_v63 = vsel %vm532_vm3, %v533_v13, 0.0 }
 0x1b9   :  { %s578_s10 = spop %577 }
 0x1be   :  { %s580_s11 = spop %579 }
 0x1bf   :  { %s520_s12 = sadd.f32 %s580_s11, %s578_s10 }
 0x1c1   :  { %v529_v46 = vstv %s520_s12 }
 0x1c2   :  { %v530_v55 = vsel %vm528_vm10, %v529_v46, 0.0 }
 0x1c3   :  { %v531_v34 = vadd.f32 %v530_v55, %v527_v21 }
 0x1c5   :  { %v535_v1 = vadd.f32 %v534_v63, %v531_v34 }
 0x1c7   :  { %536 = vst [vmem:[#allocation7] sm:$0xff] %v535_v1 }
 0x1c8   :  { %687 = shalt.err (!%p684_p6)
}
 0x1c9   :  { %s688_s18 = scalar_lea.hbm %s1476_s2, 128 }
 0x1ca   :  { %p689_p7 = scmp.ne.s32.totalorder %s1476_s2, %s688_s18  ;;  %p692_p8 = scmp.lt.u32.totalorder %s688_s18, %s1476_s2 }
 0x1cc   :  { %p694_p9 = pnand %p692_p8, %p689_p7 }
 0x1ce   :  { %697 = shalt.err (!%p694_p9)
}
 0x1cf   :  { %546 = dma.vmem_to_hbm [thread:$0]  %s544_s14, 128, %s1476_s2, [#allocation4]  }
 0x1d0   :  { %702 = dma.done.wait [#allocation4], 128  }
 0x1d1   :  { %703 = vsyncadd [#allocation4], 4294967168 }
 0x1d2   :  { %550 = vsyncpa [#allocation3], 1 }
 0x1d3   :  { %551 = vsyncpa [#allocation6], 1 }
 0x1d4   :  { %552 = vsyncpa [#allocation4], 1 }

</bundles_post_ra>
